<compile_context>
chip_gen: v5e
topology: v5e:2x2
jax: 0.10.0
libtpu: 0.0.40
codegen_flags: <defaults>
</compile_context>

<pallas_src>
import functools
from math import sqrt

import jax
import jax.numpy as jnp
from jax import lax
from jax.experimental import pallas as pl
from jax.experimental.pallas import tpu as pltpu


# --------------------------------------------------------------------------
# Flash-attention kernel (per (batch*head, q-tile, kv-tile) grid step)
# --------------------------------------------------------------------------
def _flash_attn_kernel(q_ref, k_ref, v_ref, o_ref, m_ref, l_ref, acc_ref,
                       qsc_ref, *, scale):
    # q_ref: (1, tq, E)  k_ref: (1, tk, E)  v_ref: (1, tk, D)  o_ref: (1, tq, D)
    kv = pl.program_id(2)

    @pl.when(kv == 0)
    def _():
        m_ref[...] = jnp.full_like(m_ref, -jnp.inf)
        l_ref[...] = jnp.zeros_like(l_ref)
        acc_ref[...] = jnp.zeros_like(acc_ref)
        # Fold the softmax scale into the (tq, E) q tile once per q tile; the
        # q block index is invariant along the kv grid axis, so the cached
        # bf16 copy is reused by every kv step.
        qsc_ref[...] = (q_ref[0].astype(jnp.float32) * scale).astype(
            jnp.bfloat16)

    q = qsc_ref[...]                                                   # (tq, E) bf16
    k = k_ref[0].astype(jnp.bfloat16)                                  # (tk, E)
    v = v_ref[0].astype(jnp.bfloat16)                                  # (tk, D)

    # scores[l, s] = sum_e q[l, e] * k[s, e]  (contract last dims, no k.T)
    s = lax.dot_general(q, k, (((1,), (1,)), ((), ())),
                        preferred_element_type=jnp.float32)            # (tq, tk)

    m_prev = m_ref[...]                                                 # (tq, 1)
    m_new = jnp.maximum(m_prev, jnp.max(s, axis=-1, keepdims=True))
    alpha = jnp.exp(m_prev - m_new)                                     # (tq, 1)
    p = jnp.exp(s - m_new)                                              # f32

    l_ref[...] = alpha * l_ref[...] + jnp.sum(p, axis=-1, keepdims=True)
    acc_ref[...] = alpha * acc_ref[...] + jnp.dot(
        p.astype(jnp.bfloat16), v, preferred_element_type=jnp.float32)
    m_ref[...] = m_new

    @pl.when(kv == pl.num_programs(2) - 1)
    def _():
        # Normalize the (tq, D) accumulator once (EUP reciprocal, free slot).
        o_ref[0] = (acc_ref[...] *
                    pl.reciprocal(l_ref[...], approx=True)).astype(o_ref.dtype)


def _choose_tile(n, target):
    """Largest power-of-two tile <= target that divides n (>=8), else n."""
    if n <= target:
        return n
    t = target
    while t >= 8:
        if n % t == 0:
            return t
        t //= 2
    return n


def flash_attention_heads(q, k, v, scale=None, *, block_q=None, block_k=None):
    """Head-major attention: q (B,H,L,E), k (B,H,S,E), v (B,H,S,D) -> (B,H,L,D)."""
    B, H, L, E = q.shape
    _, _, S, D = v.shape
    scale = float(scale) if scale is not None else 1.0 / sqrt(E)

    # Fuse batch and heads into one grid axis (free reshape of leading dims).
    qf = q.reshape(B * H, L, E)
    kf = k.reshape(B * H, S, E)
    vf = v.reshape(B * H, S, D)

    tq = block_q if block_q is not None else _choose_tile(L, 256)
    tk = block_k if block_k is not None else _choose_tile(S, 256)
    assert L % tq == 0 and S % tk == 0, "tile sizes must divide L and S"
    grid = (B * H, L // tq, S // tk)

    itemsize = jnp.dtype(q.dtype).itemsize
    cost = pl.CostEstimate(
        flops=2 * B * H * L * S * (E + D),
        transcendentals=B * H * L * S,
        bytes_accessed=int((qf.size + kf.size + vf.size + B * H * L * D)
                           * itemsize),
    )

    kernel = functools.partial(_flash_attn_kernel, scale=scale)
    out = pl.pallas_call(
        kernel,
        out_shape=jax.ShapeDtypeStruct((B * H, L, D), q.dtype),
        grid_spec=pltpu.PrefetchScalarGridSpec(
            num_scalar_prefetch=0,
            grid=grid,
            in_specs=[
                pl.BlockSpec((1, tq, E), lambda bh, qi, ki: (bh, qi, 0)),
                pl.BlockSpec((1, tk, E), lambda bh, qi, ki: (bh, ki, 0)),
                pl.BlockSpec((1, tk, D), lambda bh, qi, ki: (bh, ki, 0)),
            ],
            out_specs=pl.BlockSpec((1, tq, D), lambda bh, qi, ki: (bh, qi, 0)),
            scratch_shapes=[
                pltpu.VMEM((tq, 1), jnp.float32),     # running max m
                pltpu.VMEM((tq, 1), jnp.float32),     # running denom l
                pltpu.VMEM((tq, D), jnp.float32),     # output accumulator
                pltpu.VMEM((tq, E), jnp.bfloat16),    # cached scaled q tile
            ],
        ),
        compiler_params=pltpu.CompilerParams(
            dimension_semantics=("parallel", "parallel", "arbitrary"),
            vmem_limit_bytes=32 * 1024 * 1024,
        ),
        cost_estimate=cost,
    )(qf, kf, vf)
    return out.reshape(B, H, L, D)


# --------------------------------------------------------------------------
# FullAttention.forward with the original (B, L, H, E) interface
# --------------------------------------------------------------------------
def full_attention(queries, keys, values, scale=None, *, block_q=None,
                   block_k=None):
    """(B,L,H,E), (B,S,H,E), (B,S,H,D) -> (B,L,H,D). Dropout = identity."""
    # Layout adaptation only for this standalone interface; the fused
    # AttentionLayer path below produces head-major tensors directly.
    q = jnp.transpose(queries, (0, 2, 1, 3))
    k = jnp.transpose(keys, (0, 2, 1, 3))
    v = jnp.transpose(values, (0, 2, 1, 3))
    out = flash_attention_heads(q, k, v, scale, block_q=block_q,
                                block_k=block_k)
    return jnp.transpose(out, (0, 2, 1, 3))


# --------------------------------------------------------------------------
# AttentionLayer.forward (projections in XLA, attention core in Pallas)
# --------------------------------------------------------------------------
def init_attention_layer_params(key, d_model, n_heads, d_keys=None,
                                d_values=None):
    d_keys = d_keys or d_model // n_heads
    d_values = d_values or d_model // n_heads
    ks = jax.random.split(key, 8)

    def lin(kw, kb, out_f, in_f):
        bound = 1.0 / sqrt(in_f)
        w = jax.random.uniform(kw, (out_f, in_f), jnp.float32, -bound, bound)
        b = jax.random.uniform(kb, (out_f,), jnp.float32, -bound, bound)
        return w, b

    wq, bq = lin(ks[0], ks[1], d_keys * n_heads, d_model)
    wk, bk = lin(ks[2], ks[3], d_keys * n_heads, d_model)
    wv, bv = lin(ks[4], ks[5], d_values * n_heads, d_model)
    wo, bo = lin(ks[6], ks[7], d_model, d_values * n_heads)
    return dict(wq=wq, bq=bq, wk=wk, bk=bk, wv=wv, bv=bv, wo=wo, bo=bo)


def attention_layer_forward(params, queries, keys, values, n_heads, mix=True,
                            *, block_q=None, block_k=None):
    """AttentionLayer.forward (mix=True by default, as in the PyTorch module)."""
    B, L, d_model = queries.shape
    _, S, _ = keys.shape
    H = n_heads
    d_k = params["wq"].shape[0] // H
    d_v = params["wv"].shape[0] // H

    # Project straight into head-major (B, H, L, d): no standalone transposes.
    q = jnp.einsum("bld,hkd->bhlk", queries,
                   params["wq"].reshape(H, d_k, d_model))
    q = q + params["bq"].reshape(H, d_k)[None, :, None, :]
    k = jnp.einsum("bsd,hkd->bhsk", keys,
                   params["wk"].reshape(H, d_k, d_model))
    k = k + params["bk"].reshape(H, d_k)[None, :, None, :]
    v = jnp.einsum("bsd,hkd->bhsk", values,
                   params["wv"].reshape(H, d_v, d_model))
    v = v + params["bv"].reshape(H, d_v)[None, :, None, :]

    scale = 1.0 / sqrt(d_k)   # FullAttention(scale=None)
    out = flash_attention_heads(q, k, v, scale, block_q=block_q,
                                block_k=block_k)          # (B, H, L, d_v)

    if mix:
        # torch: out.transpose(2,1).contiguous().view(B, L, -1) applied to the
        # (B, L, H, D) attention output == row-major reshape of the head-major
        # (B, H, L, D) tensor the kernel already produces.
        out = out.reshape(B, L, H * d_v)
    else:
        out = jnp.transpose(out, (0, 2, 1, 3)).reshape(B, L, H * d_v)
    return out @ params["wo"].T + params["bo"]


# --------------------------------------------------------------------------
# Pure-JAX references (mirror the PyTorch code exactly, f32 everywhere)
# --------------------------------------------------------------------------
def _full_attention_reference(queries, keys, values, scale=None):
    B, L, H, E = queries.shape
    scale = scale if scale is not None else 1.0 / sqrt(E)
    scores = jnp.einsum("blhe,bshe->bhls", queries, keys)
    A = jax.nn.softmax(scale * scores, axis=-1)
    return jnp.einsum("bhls,bshd->blhd", A, values)


def _attention_layer_reference(params, queries, keys, values, n_heads,
                               mix=True):
    B, L, _ = queries.shape
    _, S, _ = keys.shape
    H = n_heads
    q = (queries @ params["wq"].T + params["bq"]).reshape(B, L, H, -1)
    k = (keys @ params["wk"].T + params["bk"]).reshape(B, S, H, -1)
    v = (values @ params["wv"].T + params["bv"]).reshape(B, S, H, -1)
    out = _full_attention_reference(q, k, v)
    if mix:
        out = jnp.transpose(out, (0, 2, 1, 3))
    out = out.reshape(B, L, -1)
    return out @ params["wo"].T + params["bo"]


if __name__ == "__main__":
    key = jax.random.PRNGKey(0)
    B, L, S, d_model, n_heads = 2, 16, 16, 64, 2

    k_p, k_q, k_k, k_v = jax.random.split(key, 4)
    params = init_attention_layer_params(k_p, d_model, n_heads)
    queries = jax.random.normal(k_q, (B, L, d_model), dtype=jnp.float32)
    keys = jax.random.normal(k_k, (B, S, d_model), dtype=jnp.float32)
    values = jax.random.normal(k_v, (B, S, d_model), dtype=jnp.float32)

    # Small blocks so the test exercises the multi-tile online-softmax path.
    out = attention_layer_forward(params, queries, keys, values, n_heads,
                                  block_q=8, block_k=8)
    out = jax.block_until_ready(out)
    ref = _attention_layer_reference(params, queries, keys, values, n_heads)
    assert out.shape == (B, L, d_model)
    # Tolerance accounts for bf16 MXU inputs + approximate reciprocal.
    assert jnp.allclose(out, ref, atol=5e-2, rtol=5e-2), (
        "AttentionLayer mismatch: max abs err = "
        f"{float(jnp.max(jnp.abs(out - ref)))}")

    # Also check the standalone FullAttention core against the softmax ref.
    H, E = n_heads, d_model // n_heads
    qh = jax.random.normal(jax.random.PRNGKey(1), (B, L, H, E), jnp.float32)
    kh = jax.random.normal(jax.random.PRNGKey(2), (B, S, H, E), jnp.float32)
    vh = jax.random.normal(jax.random.PRNGKey(3), (B, S, H, E), jnp.float32)
    attn = jax.block_until_ready(
        full_attention(qh, kh, vh, block_q=8, block_k=8))
    attn_ref = _full_attention_reference(qh, kh, vh)
    assert jnp.allclose(attn, attn_ref, atol=5e-2, rtol=5e-2), (
        "FullAttention mismatch: max abs err = "
        f"{float(jnp.max(jnp.abs(attn - attn_ref)))}")

    print("KERNEL_OK")
</pallas_src>

<mosaic_0001>
module attributes {stable_mosaic.version = 11 : i64} {
  func.func @_flash_attn_kernel(%arg0: i32, %arg1: i32, %arg2: i32, %arg3: memref<1x8x32xf32, #tpu.memory_space<vmem>>, %arg4: memref<1x8x32xf32, #tpu.memory_space<vmem>>, %arg5: memref<1x8x32xf32, #tpu.memory_space<vmem>>, %arg6: memref<1x8x32xf32, #tpu.memory_space<vmem>>, %arg7: memref<8x1xf32, #tpu.memory_space<vmem>>, %arg8: memref<8x1xf32, #tpu.memory_space<vmem>>, %arg9: memref<8x32xf32, #tpu.memory_space<vmem>>, %arg10: memref<8x32xbf16, #tpu.memory_space<vmem>>) attributes {dimension_semantics = [#tpu.dimension_semantics<parallel>, #tpu.dimension_semantics<parallel>, #tpu.dimension_semantics<arbitrary>], iteration_bounds = array<i64: 4, 2, 2>, scalar_prefetch = 0 : i64, scratch_operands = 4 : i64, tpu.core_type = #tpu.core_type<tc>, window_params = [{transform_indices = @transform_0, window_bounds = array<i64: 1, 8, 32>}, {transform_indices = @transform_1, window_bounds = array<i64: 1, 8, 32>}, {transform_indices = @transform_2, window_bounds = array<i64: 1, 8, 32>}, {transform_indices = @transform_3, window_bounds = array<i64: 1, 8, 32>}]} {
    %c0_i32 = arith.constant 0 : i32
    %0 = arith.cmpi eq, %arg2, %c0_i32 : i32
    %1 = arith.extui %0 : i1 to i32
    %c0_i32_0 = arith.constant 0 : i32
    %2 = arith.cmpi ne, %1, %c0_i32_0 : i32
    scf.if %2 {
      %cst_24 = arith.constant 0xFF800000 : f32
      %37 = vector.broadcast %cst_24 : f32 to vector<8x1xf32>
      %c0_25 = arith.constant 0 : index
      %c0_26 = arith.constant 0 : index
      %38 = vector.load %arg7[%c0_25, %c0_26] : memref<8x1xf32, #tpu.memory_space<vmem>>, vector<8x1xf32>
      tpu.vector_store %arg7[%c0_25, %c0_26], %37 {strides = array<i32>} : memref<8x1xf32, #tpu.memory_space<vmem>>, vector<8x1xf32>,
      %cst_27 = arith.constant 0.000000e+00 : f32
      %39 = vector.broadcast %cst_27 : f32 to vector<8x1xf32>
      %c0_28 = arith.constant 0 : index
      %c0_29 = arith.constant 0 : index
      %40 = vector.load %arg8[%c0_28, %c0_29] : memref<8x1xf32, #tpu.memory_space<vmem>>, vector<8x1xf32>
      tpu.vector_store %arg8[%c0_28, %c0_29], %39 {strides = array<i32>} : memref<8x1xf32, #tpu.memory_space<vmem>>, vector<8x1xf32>,
      %cst_30 = arith.constant 0.000000e+00 : f32
      %41 = vector.broadcast %cst_30 : f32 to vector<8x32xf32>
      %c0_31 = arith.constant 0 : index
      %c0_32 = arith.constant 0 : index
      %42 = vector.load %arg9[%c0_31, %c0_32] : memref<8x32xf32, #tpu.memory_space<vmem>>, vector<8x32xf32>
      tpu.vector_store %arg9[%c0_31, %c0_32], %41 {strides = array<i32>} : memref<8x32xf32, #tpu.memory_space<vmem>>, vector<8x32xf32>,
      %c0_33 = arith.constant 0 : index
      %c0_34 = arith.constant 0 : index
      %c0_35 = arith.constant 0 : index
      %43 = vector.load %arg3[%c0_33, %c0_34, %c0_35] : memref<1x8x32xf32, #tpu.memory_space<vmem>>, vector<1x8x32xf32>
      %44 = vector.shape_cast %43 : vector<1x8x32xf32> to vector<8x32xf32>
      %cst_36 = arith.constant 0.176776692 : f32
      %45 = vector.broadcast %cst_36 : f32 to vector<8x32xf32>
      %46 = arith.mulf %44, %45 : vector<8x32xf32>
      %47 = arith.truncf %46 : vector<8x32xf32> to vector<8x32xbf16>
      %c0_37 = arith.constant 0 : index
      %c0_38 = arith.constant 0 : index
      %48 = vector.load %arg10[%c0_37, %c0_38] : memref<8x32xbf16, #tpu.memory_space<vmem>>, vector<8x32xbf16>
      tpu.vector_store %arg10[%c0_37, %c0_38], %47 {strides = array<i32>} : memref<8x32xbf16, #tpu.memory_space<vmem>>, vector<8x32xbf16>,
    } else {
    }
    %c0 = arith.constant 0 : index
    %c0_1 = arith.constant 0 : index
    %3 = vector.load %arg10[%c0, %c0_1] : memref<8x32xbf16, #tpu.memory_space<vmem>>, vector<8x32xbf16>
    %c0_2 = arith.constant 0 : index
    %c0_3 = arith.constant 0 : index
    %c0_4 = arith.constant 0 : index
    %4 = vector.load %arg4[%c0_2, %c0_3, %c0_4] : memref<1x8x32xf32, #tpu.memory_space<vmem>>, vector<1x8x32xf32>
    %5 = vector.shape_cast %4 : vector<1x8x32xf32> to vector<8x32xf32>
    %6 = arith.truncf %5 : vector<8x32xf32> to vector<8x32xbf16>
    %c0_5 = arith.constant 0 : index
    %c0_6 = arith.constant 0 : index
    %c0_7 = arith.constant 0 : index
    %7 = vector.load %arg5[%c0_5, %c0_6, %c0_7] : memref<1x8x32xf32, #tpu.memory_space<vmem>>, vector<1x8x32xf32>
    %8 = vector.shape_cast %7 : vector<1x8x32xf32> to vector<8x32xf32>
    %9 = arith.truncf %8 : vector<8x32xf32> to vector<8x32xbf16>
    %cst = arith.constant dense<0.000000e+00> : vector<8x8xf32>
    %10 = tpu.matmul %3, %6, %cst {dimension_numbers = #tpu.dot_dimension_numbers<[1], [1], [0], [0], [0, 0, 1, 0], [], []>} : vector<8x32xbf16>, vector<8x32xbf16>, vector<8x8xf32> -> vector<8x8xf32>
    %c0_8 = arith.constant 0 : index
    %c0_9 = arith.constant 0 : index
    %11 = vector.load %arg7[%c0_8, %c0_9] : memref<8x1xf32, #tpu.memory_space<vmem>>, vector<8x1xf32>
    %cst_10 = arith.constant dense<0xFF800000> : vector<8xf32>
    %12 = vector.multi_reduction <maximumf>, %10, %cst_10 [1] : vector<8x8xf32> to vector<8xf32>
    %13 = vector.shape_cast %12 : vector<8xf32> to vector<8x1xf32>
    %14 = arith.maximumf %11, %13 : vector<8x1xf32>
    %15 = arith.subf %11, %14 : vector<8x1xf32>
    %16 = math.exp %15 : vector<8x1xf32>
    %17 = vector.broadcast %14 : vector<8x1xf32> to vector<8x8xf32>
    %18 = arith.subf %10, %17 : vector<8x8xf32>
    %19 = math.exp %18 : vector<8x8xf32>
    %c0_11 = arith.constant 0 : index
    %c0_12 = arith.constant 0 : index
    %20 = vector.load %arg8[%c0_11, %c0_12] : memref<8x1xf32, #tpu.memory_space<vmem>>, vector<8x1xf32>
    %21 = arith.mulf %16, %20 : vector<8x1xf32>
    %cst_13 = arith.constant dense<0.000000e+00> : vector<8xf32>
    %22 = vector.multi_reduction <add>, %19, %cst_13 [1] : vector<8x8xf32> to vector<8xf32>
    %23 = vector.shape_cast %22 : vector<8xf32> to vector<8x1xf32>
    %24 = arith.addf %21, %23 : vector<8x1xf32>
    %c0_14 = arith.constant 0 : index
    %c0_15 = arith.constant 0 : index
    %25 = vector.load %arg8[%c0_14, %c0_15] : memref<8x1xf32, #tpu.memory_space<vmem>>, vector<8x1xf32>
    tpu.vector_store %arg8[%c0_14, %c0_15], %24 {strides = array<i32>} : memref<8x1xf32, #tpu.memory_space<vmem>>, vector<8x1xf32>,
    %c0_16 = arith.constant 0 : index
    %c0_17 = arith.constant 0 : index
    %26 = vector.load %arg9[%c0_16, %c0_17] : memref<8x32xf32, #tpu.memory_space<vmem>>, vector<8x32xf32>
    %27 = vector.broadcast %16 : vector<8x1xf32> to vector<8x32xf32>
    %28 = arith.mulf %27, %26 : vector<8x32xf32>
    %29 = arith.truncf %19 : vector<8x8xf32> to vector<8x8xbf16>
    %cst_18 = arith.constant dense<0.000000e+00> : vector<8x32xf32>
    %30 = tpu.matmul %29, %9, %cst_18 {dimension_numbers = #tpu.dot_dimension_numbers<[1], [0], [0], [1], [0, 0, 1, 1], [], []>} : vector<8x8xbf16>, vector<8x32xbf16>, vector<8x32xf32> -> vector<8x32xf32>
    %31 = arith.addf %28, %30 : vector<8x32xf32>
    %c0_19 = arith.constant 0 : index
    %c0_20 = arith.constant 0 : index
    %32 = vector.load %arg9[%c0_19, %c0_20] : memref<8x32xf32, #tpu.memory_space<vmem>>, vector<8x32xf32>
    tpu.vector_store %arg9[%c0_19, %c0_20], %31 {strides = array<i32>} : memref<8x32xf32, #tpu.memory_space<vmem>>, vector<8x32xf32>,
    %c0_21 = arith.constant 0 : index
    %c0_22 = arith.constant 0 : index
    %33 = vector.load %arg7[%c0_21, %c0_22] : memref<8x1xf32, #tpu.memory_space<vmem>>, vector<8x1xf32>
    tpu.vector_store %arg7[%c0_21, %c0_22], %14 {strides = array<i32>} : memref<8x1xf32, #tpu.memory_space<vmem>>, vector<8x1xf32>,
    %c1_i32 = arith.constant 1 : i32
    %34 = arith.cmpi eq, %arg2, %c1_i32 : i32
    %35 = arith.extui %34 : i1 to i32
    %c0_i32_23 = arith.constant 0 : i32
    %36 = arith.cmpi ne, %35, %c0_i32_23 : i32
    scf.if %36 {
      %c0_24 = arith.constant 0 : index
      %c0_25 = arith.constant 0 : index
      %37 = vector.load %arg9[%c0_24, %c0_25] : memref<8x32xf32, #tpu.memory_space<vmem>>, vector<8x32xf32>
      %c0_26 = arith.constant 0 : index
      %c0_27 = arith.constant 0 : index
      %38 = vector.load %arg8[%c0_26, %c0_27] : memref<8x1xf32, #tpu.memory_space<vmem>>, vector<8x1xf32>
      %39 = tpu.reciprocal %38 {approx = true} : vector<8x1xf32> -> vector<8x1xf32>
      %40 = vector.broadcast %39 : vector<8x1xf32> to vector<8x32xf32>
      %41 = arith.mulf %37, %40 : vector<8x32xf32>
      %c0_28 = arith.constant 0 : index
      %c0_29 = arith.constant 0 : index
      %c0_30 = arith.constant 0 : index
      %42 = vector.load %arg6[%c0_28, %c0_29, %c0_30] : memref<1x8x32xf32, #tpu.memory_space<vmem>>, vector<1x8x32xf32>
      %43 = vector.shape_cast %42 : vector<1x8x32xf32> to vector<8x32xf32>
      %44 = vector.shape_cast %41 : vector<8x32xf32> to vector<1x8x32xf32>
      tpu.vector_store %arg6[%c0_28, %c0_29, %c0_30], %44 {strides = array<i32>} : memref<1x8x32xf32, #tpu.memory_space<vmem>>, vector<1x8x32xf32>,
    } else {
    }
    return
  }
  func.func @transform_0(%arg0: i32, %arg1: i32, %arg2: i32) -> (i32, i32, i32) {
    %c0_i32 = arith.constant 0 : i32
    %c0_i32_0 = arith.constant 0 : i32
    return %arg0, %arg1, %c0_i32 : i32, i32, i32
  }
  func.func @transform_1(%arg0: i32, %arg1: i32, %arg2: i32) -> (i32, i32, i32) {
    %c0_i32 = arith.constant 0 : i32
    %c0_i32_0 = arith.constant 0 : i32
    return %arg0, %arg2, %c0_i32 : i32, i32, i32
  }
  func.func @transform_2(%arg0: i32, %arg1: i32, %arg2: i32) -> (i32, i32, i32) {
    %c0_i32 = arith.constant 0 : i32
    %c0_i32_0 = arith.constant 0 : i32
    return %arg0, %arg2, %c0_i32 : i32, i32, i32
  }
  func.func @transform_3(%arg0: i32, %arg1: i32, %arg2: i32) -> (i32, i32, i32) {
    %c0_i32 = arith.constant 0 : i32
    %c0_i32_0 = arith.constant 0 : i32
    return %arg0, %arg1, %c0_i32 : i32, i32, i32
  }
}

</mosaic_0001>

<bundles_post_ra>
// kernel: tpu_custom_call.1
= control target key start
LH: loop header
LB: loop body
LE: loop exit
PB: predicated region body
PF: predicated region fallthrough
CT: control target
= control target key end

     0   :  { %s1293_s0 = inlined_call_operand.hbm [shape: f32[4,16,32], index: 0, kind: input, shape index: {}]   ;;  %s1294_s1 = inlined_call_operand.hbm [shape: f32[4,16,32], index: 1, kind: input, shape index: {}]   ;;  %s1295_s2 = inlined_call_operand.hbm [shape: f32[4,16,32], index: 2, kind: input, shape index: {}]   ;;  %s1296_s3 = inlined_call_operand.hbm [shape: f32[4,16,32], index: 3, kind: output, shape index: {}]  }
   0x1   :  { %1313 = sst [smem:[#allocation30_spill]] %s1294_s1 }
   0x2   :  { %1314 = sst [smem:[#allocation31_spill]] %s1295_s2 }
   0x3   :  { %1315 = sst [smem:[#allocation32_spill]] %s1296_s3 }
   0x4   :  { %8 = vsyncpa [#allocation7], 0 }
   0x5   :  { %10 = vsyncpa [#allocation7 + $0x1], 0 }
   0x6   :  { %11 = vsyncpa [#allocation10], 0 }
   0x7   :  { %13 = vsyncpa [#allocation10 + $0x1], 0 }
   0x8   :  { %14 = vsyncpa [#allocation8], 0 }
   0x9   :  { %16 = vsyncpa [#allocation8 + $0x1], 0  ;;  %s988_s12 = smov 0   ;;  %s990_s13 = smov 0  }
   0xa   :  { %s992_s14 = smov 0   ;;  %s994_s15 = smov 0  }
   0xb   :  { %s996_s16 = smov 0   ;;  %s998_s17 = smov 0  }
   0xc   :  { %s1000_s18 = smov 0   ;;  %s1002_s19 = smov 0  }
   0xd   :  { %s1004_s20 = smov 0   ;;  %s1006_s21 = smov 0  }
   0xe   :  { %s1008_s22 = smov 0   ;;  %s1010_s23 = smov 0  }
   0xf   :  { %s1012_s24 = smov 0  }
  0x10 LB: > { %1316 = sst [smem:[#allocation16_spill]] %s918_s13  ;;  %s1052_s25 = sadd.s32 4294967295, %s962_s24   ;;  %s962_s24 = sphi %s1012_s24, %s22_s24   ;;  %s958_s23 = sphi %s1010_s23, %s1373_s23   ;;  %s954_s22 = sphi %s1008_s22, %s1372_s22   ;;  %s950_s21 = sphi %s1006_s21, %s1371_s21   ;;  %s946_s20 = sphi %s1004_s20, %s1370_s20   ;;  %s942_s19 = sphi %s1002_s19, %s1369_s19   ;;  %s938_s18 = sphi %s1000_s18, %s1368_s18   ;;  %s934_s17 = sphi %s998_s17, %s1367_s17   ;;  %s930_s16 = sphi %s996_s16, %s1366_s16   ;;  %s926_s15 = sphi %s994_s15, %s1361_s15   ;;  %s922_s14 = sphi %s992_s14, %s1365_s14   ;;  %s918_s13 = sphi %s990_s13, %s1364_s13   ;;  %s914_s12 = sphi %s988_s12, %s1360_s12  }
  0x11   : > { %1317 = sst [smem:[#allocation17_spill]] %s926_s15  ;;  %s34_s26 = sadd.s32 1, %s950_s21 }
  0x12   : > { %1318 = sst [smem:[#allocation18_spill]] %s930_s16  ;;  %p1055_p0 = scmp.ge.s32.totalorder %s34_s26, 2 }
  0x13   : > { %1319 = sst [smem:[#allocation19_spill]] %s938_s18  ;;  %p58_p1 = scmp.eq.s32.totalorder %s962_s24, 0 }
  0x14   : > { %1320 = sst [smem:[#allocation20_spill]] %s942_s19  ;;  %p64_p2 = scmp.eq.s32.totalorder %s1052_s25, 0 }
  0x15   : > { %1321 = sst [smem:[#allocation21_spill]] %s946_s20  ;;  %s1375_s26 = smov (%p1055_p0, %s34_s26), 0 }
  0x16   : > { %1322 = sst [smem:[#allocation22_spill]] %s1052_s25  ;;  %p85_p3 = scmp.ne.s32.totalorder %s922_s14, %s918_s13 }
  0x17   : > { %p91_p4 = scmp.ne.s32.totalorder %s918_s13, %s914_s12  ;;  %p611_p7 = scmp.lt.s32.totalorder %s962_s24, 16 }
  0x18   : > { %p1074_p5 = por %p85_p3, %p58_p1  ;;  %s1298_s6 = sshll.u32 %s958_s23, 1 }
  0x19   : > { %p1080_p6 = por %p91_p4, %p64_p2  ;;  %s192_s7 = sand.u32 1, %s962_s24  }
  0x1a   : > { %s194_s8 = sand.u32 1, %s922_s14   ;;  %s200_s10 = sadd.s32 %s950_s21, %s1298_s6 }
  0x1b   : > { %s1325_s5 = scalar_select %p1080_p6, 1, 0 }
  0x1c   : > { %s1088_s9 = sshll.u32 %s194_s8, 3  ;;  %s571_s11 = sshll.u32 %s200_s10, 3 }
  0x1d   : > { %1326 = sst [smem:[#allocation23_spill]] %s1325_s5  ;;  %s196_s28 = scalar_lea.vmem [#allocation9], %s1088_s9 }
  0x1e   : > { %s1327_s1 = sld [smem:[#allocation30_spill]]  ;;  %s206_s3 = sshll.u32 %s196_s28, 4  ;;  %s207_s3 = int_to_ptr.vmem [resolvable:$true] %s206_s3 }
  0x1f   : > { %p1101_p8 = pnand %p611_p7, %p1074_p5  ;;  %s1329_s2 = sld [smem:[#allocation31_spill]] }
  0x20   : > { %p575_p9 = scmp.ge.s32.totalorder %s962_s24, 1  ;;  %s1111_s28 = scalar_lea.sflag [#allocation10], %s192_s7 }
  0x21   : > { %p232_p10 = scmp.lt.s32.totalorder %s962_s24, 17  ;;  %s563_s4 = sadd.s32 4294967294, %s962_s24  }
  0x22   : > { %s37_s29 = sadd.s32 1, %s954_s22  ;;  %p57_p12 = scmp.ne.s32.totalorder %s934_s17, %s930_s16 }
  0x23   : > { %p1117_p11 = pnand %p575_p9, %p232_p10  ;;  %s1377_s29 = smov (!%p1055_p0, %s37_s29), %s954_s22 }
  0x24   : > { %s202_s30 = scalar_lea.hbm %s1327_s1, %s571_s11  ;;  %p39_p13 = scmp.ge.s32.totalorder %s1377_s29, 2 }
  0x25   : > { %s204_s19 = sshll.u32 %s202_s30, 4  ;;  %s1108_s12 = scalar_lea.hbm %s1329_s2, %s571_s11  ;;  %s205_s19 = int_to_ptr.hbm [resolvable:$true] %s204_s19 }
  0x26   : > { %603 = dma.hbm_to_vmem [thread:$0]  (!%p1101_p8), %s205_s19, 128, %s207_s3, %s1111_s28  }
  0x27   : > { %s1330_s30 = scalar_select %p1117_p11, 1, 0 }
  0x28   : > { %s50_s11 = sadd.s32 1, %s934_s17  ;;  %p63_p3 = scmp.ne.s32.totalorder %s930_s16, %s926_s15 }
  0x29   : > { %1331 = sst [smem:[#allocation24_spill]] %s1330_s30  ;;  %p1133_p4 = por %p58_p1, %p57_p12 }
  0x2a   : > { %p145_p5 = scmp.eq.s32.totalorder %s1052_s25, 15  ;;  %s1379_s29 = smov (%p39_p13, %s1377_s29), 0 }
  0x2b   : > { %1333 = sst [smem:[#allocation25_spill]] %s1379_s29  ;;  %s1334_s19 = sadd.s32 1, %s958_s23 }
  0x2c   : > { %s1381_s19 = smov (!%p39_p13, %s1334_s19), %s958_s23  ;;  %s46_s27 = ssub.s32 %s954_s22, %s1379_s29 }
  0x2d   : > { %p1147_p0 = por %p64_p2, %p63_p3  ;;  %p43_p1 = scmp.ge.s32.totalorder %s1381_s19, 4 }
  0x2e   : > { %p1151_p9 = por %p145_p5, %p57_p12  ;;  %p151_p10 = scmp.eq.s32.totalorder %s563_s4, 15 }
  0x2f   : > { %s1335_s7 = scalar_select %p1147_p0, 1, 0 }
  0x30   : > { %s1337_s10 = scalar_select %p1151_p9, 1, 0 }
  0x31   : > { %1336 = sst [smem:[#allocation26_spill]] %s1335_s7  ;;  %s171_s6 = sand.u32 1, %s934_s17  }
  0x32   : > { %1338 = sst [smem:[#allocation27_spill]] %s1337_s10  ;;  %s1383_s19 = smov (%p43_p1, %s1381_s19), 0 }
  0x33   : > { %1339 = sst [smem:[#allocation28_spill]] %s1383_s19  ;;  %p1158_p13 = por %p151_p10, %p63_p3 }
  0x34   : > { %s45_s2 = ssub.s32 %s958_s23, %s1383_s19  ;;  %s566_s29 = sshll.u32 %s171_s6, 3 }
  0x35   : > { %s1340_s1 = scalar_select %p1158_p13, 1, 0 }
  0x36   : > { %s47_s15 = sor.u32 %s46_s27, %s45_s2  ;;  %s1342_s20 = ssub.s32 %s950_s21, %s1375_s26 }
  0x37   : > { %1341 = sst [smem:[#allocation29_spill]] %s1340_s1  ;;  %s75_s18 = sor.u32 %s1342_s20, %s45_s2 }
  0x38   : > { %p48_p2 = scmp.eq.s32.totalorder %s47_s15, 0  ;;  %p76_p12 = scmp.eq.s32.totalorder %s75_s18, 0 }
  0x39   : > { %s1343_s10 = sshll.u32 %s958_s23, 1  ;;  %s1344_s13 = sadd.s32 1, %s922_s14 }
  0x3a   : > { %s179_s4 = sadd.s32 %s954_s22, %s1343_s10  ;;  %s175_s7 = scalar_lea.vmem [#allocation6], %s566_s29 }
  0x3b   : > { %s1171_s5 = scalar_select %p48_p2, %s934_s17, %s50_s11  }
  0x3c   : > { %s1176_s25 = scalar_select %p76_p12, %s922_s14, %s1344_s13  }
  0x3d   : > { %s568_s1 = sshll.u32 %s179_s4, 3  ;;  %s185_s19 = sshll.u32 %s175_s7, 4  ;;  %s186_s19 = int_to_ptr.vmem [resolvable:$true] %s185_s19 }
  0x3e   : > { %s181_s27 = scalar_lea.hbm %s1293_s0, %s568_s1  ;;  %p598_p3 = pnand %p611_p7, %p1133_p4 }
  0x3f   : > { %s183_s2 = sshll.u32 %s181_s27, 4  ;;  %s225_s15 = sshll.u32 %s1108_s12, 4  ;;  %s184_s2 = int_to_ptr.hbm [resolvable:$true] %s183_s2  ;;  %s226_s15 = int_to_ptr.hbm [resolvable:$true] %s225_s15 }
  0x40   : > { %s172_s18 = scalar_lea.sflag [#allocation7], %s171_s6  ;;  %s217_s13 = scalar_lea.vmem [#allocation11], %s1088_s9 }
  0x41   : > { %600 = dma.hbm_to_vmem [thread:$0]  (!%p598_p3), %s184_s2, 128, %s186_s19, %s172_s18  }
  0x42   : > { %s227_s20 = sshll.u32 %s217_s13, 4  ;;  %236 = sbr.rel (%p1117_p11) target bundleno = 776 (0x308), region = 32  ;;  %s228_s20 = int_to_ptr.vmem [resolvable:$true] %s227_s20 }
  0x43   : > { %606 = dma.hbm_to_vmem [thread:$0]  (!%p1101_p8), %s226_s15, 128, %s228_s20, %s1111_s28  }
  0x44   : > { %s1346_s16 = sld [smem:[#allocation18_spill]] (!%p1117_p11) }
  0x4a   : > { %s1193_s30 = sand.u32 1, %s1346_s16  }
  0x4b   : > { %s576_s11 = sshll.u32 %s1193_s30, 3  ;;  %s239_s3 = scalar_lea.sflag [#allocation7], %s1193_s30 }
  0x4c   : > { %s242_s12 = scalar_lea.vmem [#allocation6], %s576_s11 }
  0x4d   : > { %901 = dma.done.wait (%p1147_p0), %s239_s3, 128  }
  0x4e   : > { %903 = vsyncadd (%p1147_p0), %s239_s3, 4294967168  ;;  %s1348_s6 = sld [smem:[#allocation22_spill]] }
  0x4f   : > { %s1349_s9 = sld [smem:[#allocation16_spill]] }
  0x54   : > { %s248_s28 = sand.u32 1, %s1348_s6  }
  0x55   : > { %s250_s19 = sand.u32 1, %s1349_s9   ;;  %s249_s10 = scalar_lea.sflag [#allocation10], %s248_s28 }
  0x56   : > { %s1203_s7 = sshll.u32 %s250_s19, 3 }
  0x57   : > { %s252_s4 = scalar_lea.vmem [#allocation9], %s1203_s7 }
  0x58   : > { %905 = dma.done.wait (%p1080_p6), %s249_s10, 256  }
  0x59   : > { %907 = vsyncadd (%p1080_p6), %s249_s10, 4294967040  ;;  %s262_s27 = scalar_lea.vmem [#allocation11], %s1203_s7  ;;  %s1211_s2 = scalar_lea.vmem [#allocation12], %s576_s11 }
  0x5a   : > { %s1351_s15 = sld [smem:[#allocation19_spill]] }
  0x60   : > { %p580_p7 = scmp.ne.s32.totalorder %s1351_s15, 0 }
  0x62   : > { %300 = sbr.rel (%p580_p7) target bundleno = 109 (0x6d), region = 48 }
  0x67   : > { %vm301_vm0 = vcmask 7168   ;;  %vm304_vm1 = vcmask 261120   ;;  %v306_v0 = vld [vmem:[%s242_s12] sm:$0xff]  ;;  %v964_v1 = vmov -inf   ;;  %v965_v3 = vmov 0.0  }
  0x68   : > { %302 = vst.msk [vmem:[#allocation2] sm:$0xff] %vm301_vm0, %v964_v1  ;;  %v307_v2 = vmul.f32 0.17677669, %v306_v0  ;;  %vm309_vm2 = vcmask 257024  }
  0x69   : > { %303 = vst.msk [vmem:[#allocation3] sm:$0xff] %vm301_vm0, %v965_v3 }
  0x6a   : > { %305 = vst.msk [vmem:[#allocation4] sm:$0xff] %vm304_vm1, %v965_v3  ;;  %v308_v4 = vpack.c.bf16 %v307_v2, %v307_v2 }
  0x6c   : > { %310 = vst.msk [vmem:[#allocation5] sm:$0xf] %vm309_vm2, %v308_v4 }
  0x6d PF: > { %v312_v5 = vld [vmem:[%s252_s4] sm:$0xff]  ;;  %vm316_vm3 = vcmask 261120   ;;  %vm337_vm4 = vcmask 64512   ;;  %v966_v12 = vmov 0   ;;  %vm359_vm5 = vcmask 7168   ;;  %v314_v19 = vld [vmem:[%s262_s27] sm:$0xff] }
  0x6e   : > { %v313_v6 = vpack.c.bf16 %v312_v5, %v312_v5  ;;  %721 = vset.pattern.permute.xlu0 %v966_v12  ;;  %722 = vset.pattern.permute.xlu1 %v966_v12  ;;  %vm372_vm6 = vcmask 1043456   ;;  %v315_v20 = vpack.c.bf16 %v314_v19, %v314_v19  ;;  %s1352_s18 = sld [smem:[#allocation19_spill]] }
  0x6f   : > { %v336_v13 = vld [vmem:[#allocation2] sm:$0xff] }
  0x70   : > { %v321_v7 = vsel %vm316_vm3, %v313_v6, 0  ;;  %v374_v21 = vsel %vm372_vm6, %v315_v20, 0  ;;  %v353_v29 = vld [vmem:[#allocation3] sm:$0xff] }
  0x71   : > { %330 = vmatpush.bf16.xpose.msra.mxu0 %v321_v7  ;;  %383 = vmatpush.bf16.msra.mxu1 %v374_v21  ;;  %v361_v33 = vld [vmem:[#allocation4] sm:$0xff] }
  0x73   : > { %v311_v8 = vld [vmem:[#allocation5] sm:$0xf] }
  0x74   : > { %p583_p6 = scmp.ne.s32.totalorder %s1352_s18, 1 }
  0x78   : > { %581 = vmatmul.msk.bf16.vlgmr.msra.gmra.mxu0 %vm316_vm3, %v311_v8 }
  0xf5   : > { %v332_v9 = vpop.f32.mrf.mxu0 }
  0xf6   : > { %v338_v10 = vsel %vm337_vm4, %v332_v9, -inf }
  0xf7   : > { %339 = vmax.xlane.f32.xlu0 %v338_v10 }
  0xfd   : > { %v334_v11 = vpop.f32.mrf.mxu0 }
 0x16a   : > { %v340_v14 = vpop.xlane.xlu0 %339 }
 0x16b   : > { %v341_v15 = vmax.f32 %v336_v13, %v340_v14 }
 0x16d   : > { %v342_v16 = vsub.f32 %v336_v13, %v341_v15  ;;  %391 = vst.msk [vmem:[#allocation2] sm:$0xff] %vm359_vm5, %v341_v15  ;;  %347 = vperm.xlu0 %721, %v341_v15  }
 0x16f   : > { %v343_v17 = vmul.f32 1.442695, %v342_v16 }
 0x171   : > { %723 = vpow2.f32 %v343_v17 }
 0x177   : > { %v724_v18 = vpop.eup %723 }
 0x178   : > { %364 = vperm.xlu1 %722, %v724_v18   ;;  %v354_v30 = vmul.f32 %v724_v18, %v353_v29 }
 0x1df   : > { %v348_v22 = vpop.permute.xlu0 %347 }
 0x1e0   : > { %v350_v23 = vsub.f32 %v332_v9, %v348_v22 }
 0x1e2   : > { %v351_v24 = vmul.f32 1.442695, %v350_v23 }
 0x1e4   : > { %725 = vpow2.f32 %v351_v24 }
 0x1ea   : > { %v726_v25 = vpop.eup %725  ;;  %v365_v28 = vpop.permute.xlu1 %364 }
 0x1eb   : > { %v355_v26 = vsel %vm337_vm4, %v726_v25, 0.0  ;;  %v368_v27 = vpack.c.bf16 %v726_v25, %v726_v25  ;;  %v367_v34 = vmul.f32 %v365_v28, %v361_v33 }
 0x1ec   : > { %356 = vadd.xlane.f32.xlu1 %v355_v26 }
 0x1ed   : > { %582 = vmatmul.msk.bf16.vlgmr.msra.gmra.mxu1 %vm337_vm4, %v368_v27 }
 0x25f   : > { %v357_v31 = vpop.xlane.xlu1 %356 }
 0x260   : > { %v358_v32 = vadd.f32 %v357_v31, %v354_v30 }
 0x262   : > { %360 = vst.msk [vmem:[#allocation3] sm:$0xff] %vm359_vm5, %v358_v32 }
 0x26a   : > { %v385_v35 = vpop.f32.mrf.mxu1 }
 0x26b   : > { %v389_v36 = vadd.f32 %v385_v35, %v367_v34 }
 0x26d   : > { %390 = vst.msk [vmem:[#allocation4] sm:$0xff] %vm316_vm3, %v389_v36 }
 0x26e   : > { %395 = sbr.rel (%p583_p6) target bundleno = 753 (0x2f1), region = 52 }
 0x272   : > { %v387_v37 = vpop.f32.mrf.mxu1 }
 0x273   : > { %v397_v38 = vld [vmem:[#allocation3] sm:$0xff]  ;;  %v967_v39 = vmov 0  }
 0x274   : > { %727 = vset.pattern.permute.xlu0 %v967_v39  ;;  %728 = vrcp.f32 %v397_v38  ;;  %v396_v41 = vld [vmem:[#allocation4] sm:$0xff] }
 0x27a   : > { %v729_v40 = vpop.eup %728 }
 0x27b   : > { %401 = vperm.xlu0 %727, %v729_v40  }
 0x2ed   : > { %v402_v42 = vpop.permute.xlu0 %401 }
 0x2ee   : > { %v404_v43 = vmul.f32 %v402_v42, %v396_v41 }
 0x2f0   : > { %405 = vst.msk [vmem:[%s1211_s2] sm:$0xff] %vm316_vm3, %v404_v43 }
 0x2f1 PF: > { %s1353_s13 = sld [smem:[#allocation21_spill]]  ;;  %s421_s11 = sshll.u32 %s1211_s2, 4  ;;  %s422_s11 = int_to_ptr.vmem [resolvable:$true] %s421_s11 }
 0x2f2   : > { %s1354_s20 = sld [smem:[#allocation20_spill]]  ;;  %s407_s19 = scalar_lea.sflag [#allocation8], %s1193_s30 }
 0x2f3   : > { %s1356_s9 = sld [smem:[#allocation32_spill]] }
 0x2f7   : > { %s585_s16 = sshll.u32 %s1353_s13, 1 }
 0x2f8   : > { %s417_s1 = sadd.s32 %s1354_s20, %s585_s16 }
 0x2f9   : > { %s586_s3 = sshll.u32 %s417_s1, 3  ;;  %s840_s2 = scalar_lea.hbm %s1356_s9, 64 }
 0x2fa   : > { %s419_s8 = scalar_lea.hbm %s1356_s9, %s586_s3 }
 0x2fb   : > { %s423_s28 = sshll.u32 %s419_s8, 4  ;;  %s424_s28 = int_to_ptr.hbm [resolvable:$true] %s423_s28 }
 0x2fc   : > { %s834_s7 = sshra.s32 %s424_s28, 4  ;;  %s835_s7 = int_to_ptr.hbm [resolvable:$true] %s834_s7 }
 0x2fd   : > { %s836_s10 = scalar_lea.hbm %s835_s7, 8  ;;  %p841_p5 = scmp.lt.s32.totalorder %s835_s7, %s1356_s9 }
 0x2fe   : > { %p837_p8 = scmp.ne.s32.totalorder %s835_s7, %s836_s10  ;;  %p842_p0 = scmp.lt.s32.totalorder %s840_s2, %s836_s10 }
 0x300   : > { %p838_p11 = pnand %p837_p8, %p1151_p9  ;;  %p843_p1 = por %p842_p0, %p841_p5 }
 0x302   : > { %p839_p4 = pneg %p838_p11 }
 0x304   : > { %p844_p10 = pnand %p843_p1, %p839_p4 }
 0x306   : > { %847 = shalt.err (!%p844_p10)
}
 0x307   : > { %595 = dma.vmem_to_hbm [thread:$0]  (%p1151_p9), %s422_s11, 128, %s424_s28, %s407_s19  }
 0x308 PF: > { %s1357_s30 = sld [smem:[#allocation17_spill]]  ;;  %p612_p2 = scmp.ge.s32.totalorder %s962_s24, 2 }
 0x30a   : > { %p608_p12 = pnand %p612_p2, %p1158_p13 }
 0x30c   : > { %p609_p3 = pneg %p608_p12 }
 0x30e   : > { %s435_s20 = sand.u32 1, %s1357_s30  }
 0x30f   : > { %s436_s16 = scalar_lea.sflag [#allocation8], %s435_s20 }
 0x310   : > { %909 = dma.done.wait (%p609_p3), %s436_s16, 128  }
 0x311   : > { %911 = vsyncadd (%p609_p3), %s436_s16, 4294967168  ;;  %s22_s24 = sadd.s32 1, %s962_s24   ;;  %s1360_s12 = sld [smem:[#allocation16_spill]] }
 0x312   : > { %p1249_p7 = scmp.ge.s32.totalorder %s22_s24, 18   ;;  %s1361_s15 = sld [smem:[#allocation18_spill]] }
 0x313   : > { %s1362_s29 = sld [smem:[#allocation25_spill]]  ;;  %s1364_s13 = smov %s922_s14 }
 0x314   : > { %s1363_s11 = sld [smem:[#allocation28_spill]]  ;;  %s1365_s14 = smov %s1176_s25 }
 0x315   : > { %s1366_s16 = smov %s934_s17  ;;  %s1367_s17 = smov %s1171_s5 }
 0x316   : > { %s1368_s18 = smov %s950_s21  ;;  %s1369_s19 = smov %s954_s22 }
 0x317   : > { %s1370_s20 = smov %s958_s23  ;;  %s1371_s21 = smov %s1375_s26 }
 0x318   :  { %21 = sbr.rel (!%p1249_p7) target bundleno = 16 (0x10), region = 109 }
 0x319   : > { %s1372_s22 = smov %s1362_s29 }
 0x31a   : > { %s1373_s23 = smov %s1363_s11 }
 0x31d   :  { %442 = vsyncpa [#allocation7], 1 }
 0x31e   :  { %444 = vsyncpa [#allocation7 + $0x1], 1 }
 0x31f   :  { %445 = vsyncpa [#allocation10], 1 }
 0x320   :  { %447 = vsyncpa [#allocation10 + $0x1], 1 }
 0x321   :  { %448 = vsyncpa [#allocation8], 1 }
 0x322   :  { %450 = vsyncpa [#allocation8 + $0x1], 1 }

</bundles_post_ra>
